<compile_context>
chip_gen: v7x
topology: tpu7x:2x2x1
jax: 0.10.0
libtpu: 0.0.40
codegen_flags: <defaults>
</compile_context>

<pallas_src>
import functools

import jax
import jax.numpy as jnp
from jax import lax
from jax.experimental import pallas as pl
from jax.experimental.pallas import tpu as pltpu

LANE = 128      # lane tile: classifier output padded to be lane-dense
SUBLANE = 8     # f32 sublane tile: batch padded so per-step slices are free views


def bilstm_kernel(x_ref, wih_f_ref, whh_f_ref, b_f_ref,
                  wih_b_ref, whh_b_ref, b_b_ref,
                  h0_ref, c0_ref, wout_f_ref, wout_b_ref, bout_ref,
                  out_ref, *, T, B):
    """x_ref: (T*B, E) f32 with B a multiple of 8; LSTM/head weights bf16, gate order
    [i, f, o, g] with g pre-activation pre-scaled by 2 (tanh-via-sigmoid)."""
    H = whh_f_ref.shape[0]          # whh is pre-transposed: (H, 4H)

    # ---- hoisted input projections: one batched bf16 matmul (f32 accumulate), bias
    #      folded in.  Off the serial recurrence chain. ----
    x2d = x_ref[...]                                              # (T*B, E) f32
    xg_f = (jnp.dot(x2d.astype(jnp.bfloat16), wih_f_ref[...],
                    preferred_element_type=jnp.float32)
            + b_f_ref[...])                                       # (T*B, 4H) f32
    x_last = x2d[(T - 1) * B:T * B, :]                            # aligned: B % 8 == 0
    xg_b = (jnp.dot(x_last.astype(jnp.bfloat16), wih_b_ref[...],
                    preferred_element_type=jnp.float32)
            + b_b_ref[...])                                       # (B, 4H) f32

    whh_f = whh_f_ref[...]                                        # (H, 4H) bf16, loop-invariant

    def apply_gates(gates, c):
        # kernel gate order [i, f, o, g]; the g columns of W/b were pre-scaled by 2 in the
        # wrapper so ONE sigmoid over the full contiguous (B, 4H) covers all four gates and
        # g is recovered with a VPU FMA: tanh(x) = 2*sigmoid(2x) - 1.
        sig = jax.nn.sigmoid(gates)                               # single EUP push
        i = sig[:, 0:H]
        f = sig[:, H:2 * H]
        o = sig[:, 2 * H:3 * H]
        g = 2.0 * sig[:, 3 * H:4 * H] - 1.0
        c_new = f * c + i * g                                     # f32 state
        h_new = o * jnp.tanh(c_new)
        return h_new, c_new

    # ---- forward recurrence, fully unrolled (T small & static): only the recurrent bf16
    #      matmul + gate math remain on the serial chain ----
    # TODO(synk): at production T switch to lax.fori_loop(..., unroll=4..8) or a T grid axis
    #             with h/c carried in VMEM scratch to bound vreg live ranges.
    h, c = h0_ref[0], c0_ref[0]                                   # (B, H) f32
    for t in range(T):
        gates = xg_f[t * B:(t + 1) * B, :] + jnp.dot(
            h.astype(jnp.bfloat16), whh_f, preferred_element_type=jnp.float32)
        h, c = apply_gates(gates, c)
    h_fwd = h

    # ---- backward direction: only its output at t = T-1 feeds r_out[-1], which is exactly
    #      its first step (starting from h0[1]/c0[1], reading x[T-1]) ----
    gates_b = xg_b + jnp.dot(h0_ref[1].astype(jnp.bfloat16), whh_b_ref[...],
                             preferred_element_type=jnp.float32)
    h_bwd, _ = apply_gates(gates_b, c0_ref[1])

    # dropout_layer: identity in eval mode.
    # ---- classifier head: split dots (no lane concat of h_fwd/h_bwd); output weights are
    #      lane-padded to 128 with zero columns and the bias with -1e30, so padded classes
    #      vanish under log_softmax and the store is a lane-dense unmasked vst ----
    logits = (jnp.dot(h_fwd.astype(jnp.bfloat16), wout_f_ref[...],
                      preferred_element_type=jnp.float32)
              + jnp.dot(h_bwd.astype(jnp.bfloat16), wout_b_ref[...],
                        preferred_element_type=jnp.float32)
              + bout_ref[...])                                    # (B, 128) f32
    out_ref[...] = jax.nn.log_softmax(logits, axis=-1)


def _perm_gates(w, axis, H):
    """PyTorch gate order [i, f, g, o] -> kernel order [i, f, o, g] along `axis`."""
    i_f = lax.slice_in_dim(w, 0, 2 * H, axis=axis)
    g = lax.slice_in_dim(w, 2 * H, 3 * H, axis=axis)
    o = lax.slice_in_dim(w, 3 * H, 4 * H, axis=axis)
    return jnp.concatenate([i_f, o, g], axis=axis)


def _scale_g(w, axis, H):
    """Scale the g slice (last H in kernel order) by 2 so the kernel can use a single
    sigmoid for all gates and recover tanh via 2*sigmoid(2x) - 1."""
    ifo = lax.slice_in_dim(w, 0, 3 * H, axis=axis)
    g = lax.slice_in_dim(w, 3 * H, 4 * H, axis=axis) * 2.0
    return jnp.concatenate([ifo, g], axis=axis)


def bilstm_forward(x, params, h0, c0):
    """Wrapper: constant weight prep (permute / scale / transpose / pad / bf16 cast) plus
    batch padding is cheap XLA work; everything fits VMEM -> single kernel invocation."""
    T, B, E = x.shape
    H = params["w_hh_f"].shape[1]
    out_size = params["w_out"].shape[0]

    Bp = pl.cdiv(B, SUBLANE) * SUBLANE          # sublane-aligned batch
    out_pad = LANE                              # lane-dense classifier output width

    def prep_lstm_w(w):   # (4H, K) PyTorch -> (K, 4H) bf16, gates [i,f,o,g], g cols * 2
        return _scale_g(_perm_gates(w, 0, H), 0, H).T.astype(jnp.bfloat16)

    def prep_lstm_b(b):   # (1, 4H) f32, gates [i,f,o,g], g slice * 2
        return _scale_g(_perm_gates(b, 1, H), 1, H)

    wih_f = prep_lstm_w(params["w_ih_f"])       # (E, 4H) bf16
    whh_f = prep_lstm_w(params["w_hh_f"])       # (H, 4H) bf16
    b_f = prep_lstm_b(params["b_f"])            # (1, 4H) f32
    wih_b = prep_lstm_w(params["w_ih_b"])
    whh_b = prep_lstm_w(params["w_hh_b"])
    b_b = prep_lstm_b(params["b_b"])

    # classifier head: lane-pad OUT -> 128 (zero weight columns, -1e30 bias lanes so the
    # padded classes contribute nothing to log_softmax); split fwd/bwd halves
    wout = jnp.pad(params["w_out"].T, ((0, 0), (0, out_pad - out_size)))   # (2H, 128)
    wout_f = wout[:H].astype(jnp.bfloat16)                                 # (H, 128) bf16
    wout_b = wout[H:].astype(jnp.bfloat16)
    bout = jnp.pad(params["b_out"], ((0, 0), (0, out_pad - out_size)),
                   constant_values=-1e30)                                  # (1, 128) f32

    # pad batch to the f32 sublane tile: per-step slices of xg_f become tile-aligned free
    # views and gate vregs are fully occupied; padded rows produce finite garbage that is
    # sliced off below.
    x_p = jnp.pad(x, ((0, 0), (0, Bp - B), (0, 0))).reshape(T * Bp, E)
    h0_p = jnp.pad(h0, ((0, 0), (0, Bp - B), (0, 0)))
    c0_p = jnp.pad(c0, ((0, 0), (0, Bp - B), (0, 0)))

    args = (x_p, wih_f, whh_f, b_f, wih_b, whh_b, b_b,
            h0_p, c0_p, wout_f, wout_b, bout)
    vmem = pl.BlockSpec(memory_space=pltpu.MemorySpace.VMEM)
    kernel = functools.partial(bilstm_kernel, T=T, B=Bp)
    # TODO(synk): at production sizes, add a T grid axis (or pltpu.emit_pipeline) so only a
    #             (T_tile*Bp, 4H) xg slab is resident (v7x 64MiB VMEM / v5e 16MiB scoped),
    #             and shard Bp across v7x's 2 TCs with dimension_semantics=("parallel",).
    out = pl.pallas_call(
        kernel,
        out_shape=jax.ShapeDtypeStruct((Bp, out_pad), jnp.float32),
        in_specs=[vmem] * len(args),
        out_specs=vmem,
    )(*args)
    return out[:B, :out_size]


def _reference(x, params, h0, c0):
    """Pure-JAX f32 reference of the same forward pass (PyTorch weight convention)."""
    T = x.shape[0]
    H = params["w_hh_f"].shape[1]

    def step(x_t, h, c, w_ih, w_hh, b):
        g = x_t @ w_ih.T + h @ w_hh.T + b
        i = jax.nn.sigmoid(g[:, 0 * H:1 * H])
        f = jax.nn.sigmoid(g[:, 1 * H:2 * H])
        gg = jnp.tanh(g[:, 2 * H:3 * H])
        o = jax.nn.sigmoid(g[:, 3 * H:4 * H])
        c = f * c + i * gg
        return o * jnp.tanh(c), c

    h, c = h0[0], c0[0]
    for t in range(T):
        h, c = step(x[t], h, c, params["w_ih_f"], params["w_hh_f"], params["b_f"])
    hb, _ = step(x[T - 1], h0[1], c0[1], params["w_ih_b"], params["w_hh_b"], params["b_b"])
    feat = jnp.concatenate([h, hb], axis=-1)
    logits = feat @ params["w_out"].T + params["b_out"]
    return jax.nn.log_softmax(logits, axis=-1)


def init_params(key, embedding_dim, hidden_dim, output_size):
    """Deterministic init mimicking PyTorch's uniform(-1/sqrt(H), 1/sqrt(H)),
    stored in PyTorch convention (gate order [i, f, g, o], W as (out, in))."""
    H, E = hidden_dim, embedding_dim
    k_lstm = 1.0 / jnp.sqrt(H)
    k_lin = 1.0 / jnp.sqrt(2 * H)
    keys = jax.random.split(key, 12)
    u = lambda k, shape, bound: jax.random.uniform(
        k, shape, jnp.float32, minval=-bound, maxval=bound)

    params = {
        "w_ih_f": u(keys[0], (4 * H, E), k_lstm),
        "w_hh_f": u(keys[1], (4 * H, H), k_lstm),
        # b_ih + b_hh folded into one (1, 4H) bias per direction
        "b_f": (u(keys[2], (1, 4 * H), k_lstm) + u(keys[3], (1, 4 * H), k_lstm)),
        "w_ih_b": u(keys[4], (4 * H, E), k_lstm),
        "w_hh_b": u(keys[5], (4 * H, H), k_lstm),
        "b_b": (u(keys[6], (1, 4 * H), k_lstm) + u(keys[7], (1, 4 * H), k_lstm)),
        "w_out": u(keys[8], (output_size, 2 * H), k_lin),
        "b_out": u(keys[9], (1, output_size), k_lin),
    }
    return params


if __name__ == "__main__":
    # Small, module-consistent shapes.
    T, B, E, H, OUT = 8, 4, 32, 32, 2

    key = jax.random.PRNGKey(0)
    k_x, k_h, k_c, k_p = jax.random.split(key, 4)

    x = jax.random.normal(k_x, (T, B, E), jnp.float32)
    h0 = jax.random.normal(k_h, (2, B, H), jnp.float32)   # init_hidden: torch.randn
    c0 = jax.random.normal(k_c, (2, B, H), jnp.float32)
    params = init_params(k_p, E, H, OUT)

    out = bilstm_forward(x, params, h0, c0)
    out = jax.block_until_ready(out)

    ref = _reference(x, params, h0, c0)
    assert out.shape == (B, OUT)
    # tolerance loosened vs the f32 reference because MXU operands are bf16
    assert jnp.allclose(out, ref, atol=5e-2, rtol=5e-2), (out, ref)

    print("KERNEL_OK")
</pallas_src>

<mosaic_0001>
module attributes {stable_mosaic.version = 11 : i64} {
  func.func @bilstm_kernel(%arg0: memref<64x32xf32, #tpu.memory_space<vmem>>, %arg1: memref<32x128xbf16, #tpu.memory_space<vmem>>, %arg2: memref<32x128xbf16, #tpu.memory_space<vmem>>, %arg3: memref<1x128xf32, #tpu.memory_space<vmem>>, %arg4: memref<32x128xbf16, #tpu.memory_space<vmem>>, %arg5: memref<32x128xbf16, #tpu.memory_space<vmem>>, %arg6: memref<1x128xf32, #tpu.memory_space<vmem>>, %arg7: memref<2x8x32xf32, #tpu.memory_space<vmem>>, %arg8: memref<2x8x32xf32, #tpu.memory_space<vmem>>, %arg9: memref<32x128xbf16, #tpu.memory_space<vmem>>, %arg10: memref<32x128xbf16, #tpu.memory_space<vmem>>, %arg11: memref<1x128xf32, #tpu.memory_space<vmem>>, %arg12: memref<8x128xf32, #tpu.memory_space<vmem>>) attributes {dimension_semantics = [], scalar_prefetch = 0 : i64, scratch_operands = 0 : i64, tpu.core_type = #tpu.core_type<tc>} {
    %c0 = arith.constant 0 : index
    %c0_0 = arith.constant 0 : index
    %0 = vector.load %arg0[%c0, %c0_0] : memref<64x32xf32, #tpu.memory_space<vmem>>, vector<64x32xf32>
    %1 = arith.truncf %0 : vector<64x32xf32> to vector<64x32xbf16>
    %c0_1 = arith.constant 0 : index
    %c0_2 = arith.constant 0 : index
    %2 = vector.load %arg1[%c0_1, %c0_2] : memref<32x128xbf16, #tpu.memory_space<vmem>>, vector<32x128xbf16>
    %cst = arith.constant dense<0.000000e+00> : vector<64x128xf32>
    %3 = tpu.matmul %1, %2, %cst {dimension_numbers = #tpu.dot_dimension_numbers<[1], [0], [0], [1], [0, 0, 1, 1], [], []>} : vector<64x32xbf16>, vector<32x128xbf16>, vector<64x128xf32> -> vector<64x128xf32>
    %c0_3 = arith.constant 0 : index
    %c0_4 = arith.constant 0 : index
    %4 = vector.load %arg3[%c0_3, %c0_4] : memref<1x128xf32, #tpu.memory_space<vmem>>, vector<1x128xf32>
    %5 = vector.broadcast %4 : vector<1x128xf32> to vector<64x128xf32>
    %6 = arith.addf %3, %5 : vector<64x128xf32>
    %7 = vector.extract_strided_slice %0 {offsets = [56, 0], sizes = [8, 32], strides = [1, 1]} : vector<64x32xf32> to vector<8x32xf32>
    %8 = arith.truncf %7 : vector<8x32xf32> to vector<8x32xbf16>
    %c0_5 = arith.constant 0 : index
    %c0_6 = arith.constant 0 : index
    %9 = vector.load %arg4[%c0_5, %c0_6] : memref<32x128xbf16, #tpu.memory_space<vmem>>, vector<32x128xbf16>
    %cst_7 = arith.constant dense<0.000000e+00> : vector<8x128xf32>
    %10 = tpu.matmul %8, %9, %cst_7 {dimension_numbers = #tpu.dot_dimension_numbers<[1], [0], [0], [1], [0, 0, 1, 1], [], []>} : vector<8x32xbf16>, vector<32x128xbf16>, vector<8x128xf32> -> vector<8x128xf32>
    %c0_8 = arith.constant 0 : index
    %c0_9 = arith.constant 0 : index
    %11 = vector.load %arg6[%c0_8, %c0_9] : memref<1x128xf32, #tpu.memory_space<vmem>>, vector<1x128xf32>
    %12 = vector.broadcast %11 : vector<1x128xf32> to vector<8x128xf32>
    %13 = arith.addf %10, %12 : vector<8x128xf32>
    %c0_10 = arith.constant 0 : index
    %c0_11 = arith.constant 0 : index
    %14 = vector.load %arg2[%c0_10, %c0_11] : memref<32x128xbf16, #tpu.memory_space<vmem>>, vector<32x128xbf16>
    %c0_12 = arith.constant 0 : index
    %c0_13 = arith.constant 0 : index
    %c0_14 = arith.constant 0 : index
    %15 = vector.load %arg7[%c0_12, %c0_13, %c0_14] : memref<2x8x32xf32, #tpu.memory_space<vmem>>, vector<1x8x32xf32>
    %16 = vector.shape_cast %15 : vector<1x8x32xf32> to vector<8x32xf32>
    %c0_15 = arith.constant 0 : index
    %c0_16 = arith.constant 0 : index
    %c0_17 = arith.constant 0 : index
    %17 = vector.load %arg8[%c0_15, %c0_16, %c0_17] : memref<2x8x32xf32, #tpu.memory_space<vmem>>, vector<1x8x32xf32>
    %18 = vector.shape_cast %17 : vector<1x8x32xf32> to vector<8x32xf32>
    %19 = vector.extract_strided_slice %6 {offsets = [0, 0], sizes = [8, 128], strides = [1, 1]} : vector<64x128xf32> to vector<8x128xf32>
    %20 = arith.truncf %16 : vector<8x32xf32> to vector<8x32xbf16>
    %cst_18 = arith.constant dense<0.000000e+00> : vector<8x128xf32>
    %21 = tpu.matmul %20, %14, %cst_18 {dimension_numbers = #tpu.dot_dimension_numbers<[1], [0], [0], [1], [0, 0, 1, 1], [], []>} : vector<8x32xbf16>, vector<32x128xbf16>, vector<8x128xf32> -> vector<8x128xf32>
    %22 = arith.addf %19, %21 : vector<8x128xf32>
    %23 = arith.negf %22 : vector<8x128xf32>
    %24 = math.exp %23 : vector<8x128xf32>
    %cst_19 = arith.constant 1.000000e+00 : f32
    %25 = vector.broadcast %cst_19 : f32 to vector<8x128xf32>
    %26 = arith.addf %25, %24 : vector<8x128xf32>
    %27 = arith.divf %25, %26 : vector<8x128xf32>
    %28 = vector.extract_strided_slice %27 {offsets = [0, 0], sizes = [8, 32], strides = [1, 1]} : vector<8x128xf32> to vector<8x32xf32>
    %29 = vector.extract_strided_slice %27 {offsets = [0, 32], sizes = [8, 32], strides = [1, 1]} : vector<8x128xf32> to vector<8x32xf32>
    %30 = vector.extract_strided_slice %27 {offsets = [0, 64], sizes = [8, 32], strides = [1, 1]} : vector<8x128xf32> to vector<8x32xf32>
    %31 = vector.extract_strided_slice %27 {offsets = [0, 96], sizes = [8, 32], strides = [1, 1]} : vector<8x128xf32> to vector<8x32xf32>
    %cst_20 = arith.constant 2.000000e+00 : f32
    %32 = vector.broadcast %cst_20 : f32 to vector<8x32xf32>
    %33 = arith.mulf %32, %31 : vector<8x32xf32>
    %cst_21 = arith.constant 1.000000e+00 : f32
    %34 = vector.broadcast %cst_21 : f32 to vector<8x32xf32>
    %35 = arith.subf %33, %34 : vector<8x32xf32>
    %36 = arith.mulf %29, %18 : vector<8x32xf32>
    %37 = arith.mulf %28, %35 : vector<8x32xf32>
    %38 = arith.addf %36, %37 : vector<8x32xf32>
    %39 = math.tanh %38 : vector<8x32xf32>
    %40 = arith.mulf %30, %39 : vector<8x32xf32>
    %41 = vector.extract_strided_slice %6 {offsets = [8, 0], sizes = [8, 128], strides = [1, 1]} : vector<64x128xf32> to vector<8x128xf32>
    %42 = arith.truncf %40 : vector<8x32xf32> to vector<8x32xbf16>
    %cst_22 = arith.constant dense<0.000000e+00> : vector<8x128xf32>
    %43 = tpu.matmul %42, %14, %cst_22 {dimension_numbers = #tpu.dot_dimension_numbers<[1], [0], [0], [1], [0, 0, 1, 1], [], []>} : vector<8x32xbf16>, vector<32x128xbf16>, vector<8x128xf32> -> vector<8x128xf32>
    %44 = arith.addf %41, %43 : vector<8x128xf32>
    %45 = arith.negf %44 : vector<8x128xf32>
    %46 = math.exp %45 : vector<8x128xf32>
    %cst_23 = arith.constant 1.000000e+00 : f32
    %47 = vector.broadcast %cst_23 : f32 to vector<8x128xf32>
    %48 = arith.addf %47, %46 : vector<8x128xf32>
    %49 = arith.divf %47, %48 : vector<8x128xf32>
    %50 = vector.extract_strided_slice %49 {offsets = [0, 0], sizes = [8, 32], strides = [1, 1]} : vector<8x128xf32> to vector<8x32xf32>
    %51 = vector.extract_strided_slice %49 {offsets = [0, 32], sizes = [8, 32], strides = [1, 1]} : vector<8x128xf32> to vector<8x32xf32>
    %52 = vector.extract_strided_slice %49 {offsets = [0, 64], sizes = [8, 32], strides = [1, 1]} : vector<8x128xf32> to vector<8x32xf32>
    %53 = vector.extract_strided_slice %49 {offsets = [0, 96], sizes = [8, 32], strides = [1, 1]} : vector<8x128xf32> to vector<8x32xf32>
    %cst_24 = arith.constant 2.000000e+00 : f32
    %54 = vector.broadcast %cst_24 : f32 to vector<8x32xf32>
    %55 = arith.mulf %54, %53 : vector<8x32xf32>
    %cst_25 = arith.constant 1.000000e+00 : f32
    %56 = vector.broadcast %cst_25 : f32 to vector<8x32xf32>
    %57 = arith.subf %55, %56 : vector<8x32xf32>
    %58 = arith.mulf %51, %38 : vector<8x32xf32>
    %59 = arith.mulf %50, %57 : vector<8x32xf32>
    %60 = arith.addf %58, %59 : vector<8x32xf32>
    %61 = math.tanh %60 : vector<8x32xf32>
    %62 = arith.mulf %52, %61 : vector<8x32xf32>
    %63 = vector.extract_strided_slice %6 {offsets = [16, 0], sizes = [8, 128], strides = [1, 1]} : vector<64x128xf32> to vector<8x128xf32>
    %64 = arith.truncf %62 : vector<8x32xf32> to vector<8x32xbf16>
    %cst_26 = arith.constant dense<0.000000e+00> : vector<8x128xf32>
    %65 = tpu.matmul %64, %14, %cst_26 {dimension_numbers = #tpu.dot_dimension_numbers<[1], [0], [0], [1], [0, 0, 1, 1], [], []>} : vector<8x32xbf16>, vector<32x128xbf16>, vector<8x128xf32> -> vector<8x128xf32>
    %66 = arith.addf %63, %65 : vector<8x128xf32>
    %67 = arith.negf %66 : vector<8x128xf32>
    %68 = math.exp %67 : vector<8x128xf32>
    %cst_27 = arith.constant 1.000000e+00 : f32
    %69 = vector.broadcast %cst_27 : f32 to vector<8x128xf32>
    %70 = arith.addf %69, %68 : vector<8x128xf32>
    %71 = arith.divf %69, %70 : vector<8x128xf32>
    %72 = vector.extract_strided_slice %71 {offsets = [0, 0], sizes = [8, 32], strides = [1, 1]} : vector<8x128xf32> to vector<8x32xf32>
    %73 = vector.extract_strided_slice %71 {offsets = [0, 32], sizes = [8, 32], strides = [1, 1]} : vector<8x128xf32> to vector<8x32xf32>
    %74 = vector.extract_strided_slice %71 {offsets = [0, 64], sizes = [8, 32], strides = [1, 1]} : vector<8x128xf32> to vector<8x32xf32>
    %75 = vector.extract_strided_slice %71 {offsets = [0, 96], sizes = [8, 32], strides = [1, 1]} : vector<8x128xf32> to vector<8x32xf32>
    %cst_28 = arith.constant 2.000000e+00 : f32
    %76 = vector.broadcast %cst_28 : f32 to vector<8x32xf32>
    %77 = arith.mulf %76, %75 : vector<8x32xf32>
    %cst_29 = arith.constant 1.000000e+00 : f32
    %78 = vector.broadcast %cst_29 : f32 to vector<8x32xf32>
    %79 = arith.subf %77, %78 : vector<8x32xf32>
    %80 = arith.mulf %73, %60 : vector<8x32xf32>
    %81 = arith.mulf %72, %79 : vector<8x32xf32>
    %82 = arith.addf %80, %81 : vector<8x32xf32>
    %83 = math.tanh %82 : vector<8x32xf32>
    %84 = arith.mulf %74, %83 : vector<8x32xf32>
    %85 = vector.extract_strided_slice %6 {offsets = [24, 0], sizes = [8, 128], strides = [1, 1]} : vector<64x128xf32> to vector<8x128xf32>
    %86 = arith.truncf %84 : vector<8x32xf32> to vector<8x32xbf16>
    %cst_30 = arith.constant dense<0.000000e+00> : vector<8x128xf32>
    %87 = tpu.matmul %86, %14, %cst_30 {dimension_numbers = #tpu.dot_dimension_numbers<[1], [0], [0], [1], [0, 0, 1, 1], [], []>} : vector<8x32xbf16>, vector<32x128xbf16>, vector<8x128xf32> -> vector<8x128xf32>
    %88 = arith.addf %85, %87 : vector<8x128xf32>
    %89 = arith.negf %88 : vector<8x128xf32>
    %90 = math.exp %89 : vector<8x128xf32>
    %cst_31 = arith.constant 1.000000e+00 : f32
    %91 = vector.broadcast %cst_31 : f32 to vector<8x128xf32>
    %92 = arith.addf %91, %90 : vector<8x128xf32>
    %93 = arith.divf %91, %92 : vector<8x128xf32>
    %94 = vector.extract_strided_slice %93 {offsets = [0, 0], sizes = [8, 32], strides = [1, 1]} : vector<8x128xf32> to vector<8x32xf32>
    %95 = vector.extract_strided_slice %93 {offsets = [0, 32], sizes = [8, 32], strides = [1, 1]} : vector<8x128xf32> to vector<8x32xf32>
    %96 = vector.extract_strided_slice %93 {offsets = [0, 64], sizes = [8, 32], strides = [1, 1]} : vector<8x128xf32> to vector<8x32xf32>
    %97 = vector.extract_strided_slice %93 {offsets = [0, 96], sizes = [8, 32], strides = [1, 1]} : vector<8x128xf32> to vector<8x32xf32>
    %cst_32 = arith.constant 2.000000e+00 : f32
    %98 = vector.broadcast %cst_32 : f32 to vector<8x32xf32>
    %99 = arith.mulf %98, %97 : vector<8x32xf32>
    %cst_33 = arith.constant 1.000000e+00 : f32
    %100 = vector.broadcast %cst_33 : f32 to vector<8x32xf32>
    %101 = arith.subf %99, %100 : vector<8x32xf32>
    %102 = arith.mulf %95, %82 : vector<8x32xf32>
    %103 = arith.mulf %94, %101 : vector<8x32xf32>
    %104 = arith.addf %102, %103 : vector<8x32xf32>
    %105 = math.tanh %104 : vector<8x32xf32>
    %106 = arith.mulf %96, %105 : vector<8x32xf32>
    %107 = vector.extract_strided_slice %6 {offsets = [32, 0], sizes = [8, 128], strides = [1, 1]} : vector<64x128xf32> to vector<8x128xf32>
    %108 = arith.truncf %106 : vector<8x32xf32> to vector<8x32xbf16>
    %cst_34 = arith.constant dense<0.000000e+00> : vector<8x128xf32>
    %109 = tpu.matmul %108, %14, %cst_34 {dimension_numbers = #tpu.dot_dimension_numbers<[1], [0], [0], [1], [0, 0, 1, 1], [], []>} : vector<8x32xbf16>, vector<32x128xbf16>, vector<8x128xf32> -> vector<8x128xf32>
    %110 = arith.addf %107, %109 : vector<8x128xf32>
    %111 = arith.negf %110 : vector<8x128xf32>
    %112 = math.exp %111 : vector<8x128xf32>
    %cst_35 = arith.constant 1.000000e+00 : f32
    %113 = vector.broadcast %cst_35 : f32 to vector<8x128xf32>
    %114 = arith.addf %113, %112 : vector<8x128xf32>
    %115 = arith.divf %113, %114 : vector<8x128xf32>
    %116 = vector.extract_strided_slice %115 {offsets = [0, 0], sizes = [8, 32], strides = [1, 1]} : vector<8x128xf32> to vector<8x32xf32>
    %117 = vector.extract_strided_slice %115 {offsets = [0, 32], sizes = [8, 32], strides = [1, 1]} : vector<8x128xf32> to vector<8x32xf32>
    %118 = vector.extract_strided_slice %115 {offsets = [0, 64], sizes = [8, 32], strides = [1, 1]} : vector<8x128xf32> to vector<8x32xf32>
    %119 = vector.extract_strided_slice %115 {offsets = [0, 96], sizes = [8, 32], strides = [1, 1]} : vector<8x128xf32> to vector<8x32xf32>
    %cst_36 = arith.constant 2.000000e+00 : f32
    %120 = vector.broadcast %cst_36 : f32 to vector<8x32xf32>
    %121 = arith.mulf %120, %119 : vector<8x32xf32>
    %cst_37 = arith.constant 1.000000e+00 : f32
    %122 = vector.broadcast %cst_37 : f32 to vector<8x32xf32>
    %123 = arith.subf %121, %122 : vector<8x32xf32>
    %124 = arith.mulf %117, %104 : vector<8x32xf32>
    %125 = arith.mulf %116, %123 : vector<8x32xf32>
    %126 = arith.addf %124, %125 : vector<8x32xf32>
    %127 = math.tanh %126 : vector<8x32xf32>
    %128 = arith.mulf %118, %127 : vector<8x32xf32>
    %129 = vector.extract_strided_slice %6 {offsets = [40, 0], sizes = [8, 128], strides = [1, 1]} : vector<64x128xf32> to vector<8x128xf32>
    %130 = arith.truncf %128 : vector<8x32xf32> to vector<8x32xbf16>
    %cst_38 = arith.constant dense<0.000000e+00> : vector<8x128xf32>
    %131 = tpu.matmul %130, %14, %cst_38 {dimension_numbers = #tpu.dot_dimension_numbers<[1], [0], [0], [1], [0, 0, 1, 1], [], []>} : vector<8x32xbf16>, vector<32x128xbf16>, vector<8x128xf32> -> vector<8x128xf32>
    %132 = arith.addf %129, %131 : vector<8x128xf32>
    %133 = arith.negf %132 : vector<8x128xf32>
    %134 = math.exp %133 : vector<8x128xf32>
    %cst_39 = arith.constant 1.000000e+00 : f32
    %135 = vector.broadcast %cst_39 : f32 to vector<8x128xf32>
    %136 = arith.addf %135, %134 : vector<8x128xf32>
    %137 = arith.divf %135, %136 : vector<8x128xf32>
    %138 = vector.extract_strided_slice %137 {offsets = [0, 0], sizes = [8, 32], strides = [1, 1]} : vector<8x128xf32> to vector<8x32xf32>
    %139 = vector.extract_strided_slice %137 {offsets = [0, 32], sizes = [8, 32], strides = [1, 1]} : vector<8x128xf32> to vector<8x32xf32>
    %140 = vector.extract_strided_slice %137 {offsets = [0, 64], sizes = [8, 32], strides = [1, 1]} : vector<8x128xf32> to vector<8x32xf32>
    %141 = vector.extract_strided_slice %137 {offsets = [0, 96], sizes = [8, 32], strides = [1, 1]} : vector<8x128xf32> to vector<8x32xf32>
    %cst_40 = arith.constant 2.000000e+00 : f32
    %142 = vector.broadcast %cst_40 : f32 to vector<8x32xf32>
    %143 = arith.mulf %142, %141 : vector<8x32xf32>
    %cst_41 = arith.constant 1.000000e+00 : f32
    %144 = vector.broadcast %cst_41 : f32 to vector<8x32xf32>
    %145 = arith.subf %143, %144 : vector<8x32xf32>
    %146 = arith.mulf %139, %126 : vector<8x32xf32>
    %147 = arith.mulf %138, %145 : vector<8x32xf32>
    %148 = arith.addf %146, %147 : vector<8x32xf32>
    %149 = math.tanh %148 : vector<8x32xf32>
    %150 = arith.mulf %140, %149 : vector<8x32xf32>
    %151 = vector.extract_strided_slice %6 {offsets = [48, 0], sizes = [8, 128], strides = [1, 1]} : vector<64x128xf32> to vector<8x128xf32>
    %152 = arith.truncf %150 : vector<8x32xf32> to vector<8x32xbf16>
    %cst_42 = arith.constant dense<0.000000e+00> : vector<8x128xf32>
    %153 = tpu.matmul %152, %14, %cst_42 {dimension_numbers = #tpu.dot_dimension_numbers<[1], [0], [0], [1], [0, 0, 1, 1], [], []>} : vector<8x32xbf16>, vector<32x128xbf16>, vector<8x128xf32> -> vector<8x128xf32>
    %154 = arith.addf %151, %153 : vector<8x128xf32>
    %155 = arith.negf %154 : vector<8x128xf32>
    %156 = math.exp %155 : vector<8x128xf32>
    %cst_43 = arith.constant 1.000000e+00 : f32
    %157 = vector.broadcast %cst_43 : f32 to vector<8x128xf32>
    %158 = arith.addf %157, %156 : vector<8x128xf32>
    %159 = arith.divf %157, %158 : vector<8x128xf32>
    %160 = vector.extract_strided_slice %159 {offsets = [0, 0], sizes = [8, 32], strides = [1, 1]} : vector<8x128xf32> to vector<8x32xf32>
    %161 = vector.extract_strided_slice %159 {offsets = [0, 32], sizes = [8, 32], strides = [1, 1]} : vector<8x128xf32> to vector<8x32xf32>
    %162 = vector.extract_strided_slice %159 {offsets = [0, 64], sizes = [8, 32], strides = [1, 1]} : vector<8x128xf32> to vector<8x32xf32>
    %163 = vector.extract_strided_slice %159 {offsets = [0, 96], sizes = [8, 32], strides = [1, 1]} : vector<8x128xf32> to vector<8x32xf32>
    %cst_44 = arith.constant 2.000000e+00 : f32
    %164 = vector.broadcast %cst_44 : f32 to vector<8x32xf32>
    %165 = arith.mulf %164, %163 : vector<8x32xf32>
    %cst_45 = arith.constant 1.000000e+00 : f32
    %166 = vector.broadcast %cst_45 : f32 to vector<8x32xf32>
    %167 = arith.subf %165, %166 : vector<8x32xf32>
    %168 = arith.mulf %161, %148 : vector<8x32xf32>
    %169 = arith.mulf %160, %167 : vector<8x32xf32>
    %170 = arith.addf %168, %169 : vector<8x32xf32>
    %171 = math.tanh %170 : vector<8x32xf32>
    %172 = arith.mulf %162, %171 : vector<8x32xf32>
    %173 = vector.extract_strided_slice %6 {offsets = [56, 0], sizes = [8, 128], strides = [1, 1]} : vector<64x128xf32> to vector<8x128xf32>
    %174 = arith.truncf %172 : vector<8x32xf32> to vector<8x32xbf16>
    %cst_46 = arith.constant dense<0.000000e+00> : vector<8x128xf32>
    %175 = tpu.matmul %174, %14, %cst_46 {dimension_numbers = #tpu.dot_dimension_numbers<[1], [0], [0], [1], [0, 0, 1, 1], [], []>} : vector<8x32xbf16>, vector<32x128xbf16>, vector<8x128xf32> -> vector<8x128xf32>
    %176 = arith.addf %173, %175 : vector<8x128xf32>
    %177 = arith.negf %176 : vector<8x128xf32>
    %178 = math.exp %177 : vector<8x128xf32>
    %cst_47 = arith.constant 1.000000e+00 : f32
    %179 = vector.broadcast %cst_47 : f32 to vector<8x128xf32>
    %180 = arith.addf %179, %178 : vector<8x128xf32>
    %181 = arith.divf %179, %180 : vector<8x128xf32>
    %182 = vector.extract_strided_slice %181 {offsets = [0, 0], sizes = [8, 32], strides = [1, 1]} : vector<8x128xf32> to vector<8x32xf32>
    %183 = vector.extract_strided_slice %181 {offsets = [0, 32], sizes = [8, 32], strides = [1, 1]} : vector<8x128xf32> to vector<8x32xf32>
    %184 = vector.extract_strided_slice %181 {offsets = [0, 64], sizes = [8, 32], strides = [1, 1]} : vector<8x128xf32> to vector<8x32xf32>
    %185 = vector.extract_strided_slice %181 {offsets = [0, 96], sizes = [8, 32], strides = [1, 1]} : vector<8x128xf32> to vector<8x32xf32>
    %cst_48 = arith.constant 2.000000e+00 : f32
    %186 = vector.broadcast %cst_48 : f32 to vector<8x32xf32>
    %187 = arith.mulf %186, %185 : vector<8x32xf32>
    %cst_49 = arith.constant 1.000000e+00 : f32
    %188 = vector.broadcast %cst_49 : f32 to vector<8x32xf32>
    %189 = arith.subf %187, %188 : vector<8x32xf32>
    %190 = arith.mulf %183, %170 : vector<8x32xf32>
    %191 = arith.mulf %182, %189 : vector<8x32xf32>
    %192 = arith.addf %190, %191 : vector<8x32xf32>
    %193 = math.tanh %192 : vector<8x32xf32>
    %194 = arith.mulf %184, %193 : vector<8x32xf32>
    %c1 = arith.constant 1 : index
    %c0_50 = arith.constant 0 : index
    %c0_51 = arith.constant 0 : index
    %195 = vector.load %arg7[%c1, %c0_50, %c0_51] : memref<2x8x32xf32, #tpu.memory_space<vmem>>, vector<1x8x32xf32>
    %196 = vector.shape_cast %195 : vector<1x8x32xf32> to vector<8x32xf32>
    %197 = arith.truncf %196 : vector<8x32xf32> to vector<8x32xbf16>
    %c0_52 = arith.constant 0 : index
    %c0_53 = arith.constant 0 : index
    %198 = vector.load %arg5[%c0_52, %c0_53] : memref<32x128xbf16, #tpu.memory_space<vmem>>, vector<32x128xbf16>
    %cst_54 = arith.constant dense<0.000000e+00> : vector<8x128xf32>
    %199 = tpu.matmul %197, %198, %cst_54 {dimension_numbers = #tpu.dot_dimension_numbers<[1], [0], [0], [1], [0, 0, 1, 1], [], []>} : vector<8x32xbf16>, vector<32x128xbf16>, vector<8x128xf32> -> vector<8x128xf32>
    %200 = arith.addf %13, %199 : vector<8x128xf32>
    %c1_55 = arith.constant 1 : index
    %c0_56 = arith.constant 0 : index
    %c0_57 = arith.constant 0 : index
    %201 = vector.load %arg8[%c1_55, %c0_56, %c0_57] : memref<2x8x32xf32, #tpu.memory_space<vmem>>, vector<1x8x32xf32>
    %202 = vector.shape_cast %201 : vector<1x8x32xf32> to vector<8x32xf32>
    %203 = arith.negf %200 : vector<8x128xf32>
    %204 = math.exp %203 : vector<8x128xf32>
    %cst_58 = arith.constant 1.000000e+00 : f32
    %205 = vector.broadcast %cst_58 : f32 to vector<8x128xf32>
    %206 = arith.addf %205, %204 : vector<8x128xf32>
    %207 = arith.divf %205, %206 : vector<8x128xf32>
    %208 = vector.extract_strided_slice %207 {offsets = [0, 0], sizes = [8, 32], strides = [1, 1]} : vector<8x128xf32> to vector<8x32xf32>
    %209 = vector.extract_strided_slice %207 {offsets = [0, 32], sizes = [8, 32], strides = [1, 1]} : vector<8x128xf32> to vector<8x32xf32>
    %210 = vector.extract_strided_slice %207 {offsets = [0, 64], sizes = [8, 32], strides = [1, 1]} : vector<8x128xf32> to vector<8x32xf32>
    %211 = vector.extract_strided_slice %207 {offsets = [0, 96], sizes = [8, 32], strides = [1, 1]} : vector<8x128xf32> to vector<8x32xf32>
    %cst_59 = arith.constant 2.000000e+00 : f32
    %212 = vector.broadcast %cst_59 : f32 to vector<8x32xf32>
    %213 = arith.mulf %212, %211 : vector<8x32xf32>
    %cst_60 = arith.constant 1.000000e+00 : f32
    %214 = vector.broadcast %cst_60 : f32 to vector<8x32xf32>
    %215 = arith.subf %213, %214 : vector<8x32xf32>
    %216 = arith.mulf %209, %202 : vector<8x32xf32>
    %217 = arith.mulf %208, %215 : vector<8x32xf32>
    %218 = arith.addf %216, %217 : vector<8x32xf32>
    %219 = math.tanh %218 : vector<8x32xf32>
    %220 = arith.mulf %210, %219 : vector<8x32xf32>
    %221 = arith.truncf %194 : vector<8x32xf32> to vector<8x32xbf16>
    %c0_61 = arith.constant 0 : index
    %c0_62 = arith.constant 0 : index
    %222 = vector.load %arg9[%c0_61, %c0_62] : memref<32x128xbf16, #tpu.memory_space<vmem>>, vector<32x128xbf16>
    %cst_63 = arith.constant dense<0.000000e+00> : vector<8x128xf32>
    %223 = tpu.matmul %221, %222, %cst_63 {dimension_numbers = #tpu.dot_dimension_numbers<[1], [0], [0], [1], [0, 0, 1, 1], [], []>} : vector<8x32xbf16>, vector<32x128xbf16>, vector<8x128xf32> -> vector<8x128xf32>
    %224 = arith.truncf %220 : vector<8x32xf32> to vector<8x32xbf16>
    %c0_64 = arith.constant 0 : index
    %c0_65 = arith.constant 0 : index
    %225 = vector.load %arg10[%c0_64, %c0_65] : memref<32x128xbf16, #tpu.memory_space<vmem>>, vector<32x128xbf16>
    %cst_66 = arith.constant dense<0.000000e+00> : vector<8x128xf32>
    %226 = tpu.matmul %224, %225, %cst_66 {dimension_numbers = #tpu.dot_dimension_numbers<[1], [0], [0], [1], [0, 0, 1, 1], [], []>} : vector<8x32xbf16>, vector<32x128xbf16>, vector<8x128xf32> -> vector<8x128xf32>
    %227 = arith.addf %223, %226 : vector<8x128xf32>
    %c0_67 = arith.constant 0 : index
    %c0_68 = arith.constant 0 : index
    %228 = vector.load %arg11[%c0_67, %c0_68] : memref<1x128xf32, #tpu.memory_space<vmem>>, vector<1x128xf32>
    %229 = vector.broadcast %228 : vector<1x128xf32> to vector<8x128xf32>
    %230 = arith.addf %227, %229 : vector<8x128xf32>
    %cst_69 = arith.constant dense<0xFF800000> : vector<8xf32>
    %231 = vector.multi_reduction <maximumf>, %230, %cst_69 [1] : vector<8x128xf32> to vector<8xf32>
    %cst_70 = arith.constant 0xFF800000 : f32
    %232 = vector.broadcast %cst_70 : f32 to vector<8xf32>
    %233 = arith.maximumf %232, %231 : vector<8xf32>
    %234 = vector.shape_cast %233 : vector<8xf32> to vector<8x1xf32>
    %235 = vector.broadcast %234 : vector<8x1xf32> to vector<8x128xf32>
    %236 = arith.subf %230, %235 : vector<8x128xf32>
    %237 = math.exp %236 : vector<8x128xf32>
    %cst_71 = arith.constant dense<0.000000e+00> : vector<8xf32>
    %238 = vector.multi_reduction <add>, %237, %cst_71 [1] : vector<8x128xf32> to vector<8xf32>
    %239 = vector.shape_cast %238 : vector<8xf32> to vector<8x1xf32>
    %240 = math.log %239 : vector<8x1xf32>
    %241 = vector.broadcast %240 : vector<8x1xf32> to vector<8x128xf32>
    %242 = arith.subf %236, %241 : vector<8x128xf32>
    %c0_72 = arith.constant 0 : index
    %c0_73 = arith.constant 0 : index
    %243 = vector.load %arg12[%c0_72, %c0_73] : memref<8x128xf32, #tpu.memory_space<vmem>>, vector<8x128xf32>
    tpu.vector_store %arg12[%c0_72, %c0_73], %242 {strides = array<i32>} : memref<8x128xf32, #tpu.memory_space<vmem>>, vector<8x128xf32>,
    return
  }
}

</mosaic_0001>

<bundles_post_ra>
// kernel: tpu_custom_call.1
= control target key start
LH: loop header
LB: loop body
LE: loop exit
PB: predicated region body
PF: predicated region fallthrough
CT: control target
= control target key end

     0   :  { %v1384_v1 = vmov 0.0   ;;  %vm1385_vm0 = vmmov 0   ;;  %vm78_vm1 = vcmask 261120   ;;  %s1702_s0 = inlined_call_operand.vmem [shape: f32[64,32], index: 0, kind: input, shape index: {}]   ;;  %s1703_s1 = inlined_call_operand.vmem [shape: bf16[32,128], index: 1, kind: input, shape index: {}]   ;;  %s1704_s2 = inlined_call_operand.vmem [shape: bf16[32,128], index: 2, kind: input, shape index: {}]   ;;  %s1705_s3 = inlined_call_operand.vmem [shape: f32[1,128], index: 3, kind: input, shape index: {}]   ;;  %s1706_s4 = inlined_call_operand.vmem [shape: bf16[32,128], index: 4, kind: input, shape index: {}]   ;;  %s1707_s5 = inlined_call_operand.vmem [shape: bf16[32,128], index: 5, kind: input, shape index: {}]   ;;  %s1708_s6 = inlined_call_operand.vmem [shape: f32[1,128], index: 6, kind: input, shape index: {}]   ;;  %s1709_s7 = inlined_call_operand.vmem [shape: f32[2,8,32], index: 7, kind: input, shape index: {}]   ;;  %s1710_s8 = inlined_call_operand.vmem [shape: f32[2,8,32], index: 8, kind: input, shape index: {}]   ;;  %s1711_s9 = inlined_call_operand.vmem [shape: bf16[32,128], index: 9, kind: input, shape index: {}]   ;;  %s1712_s10 = inlined_call_operand.vmem [shape: bf16[32,128], index: 10, kind: input, shape index: {}]   ;;  %s1713_s11 = inlined_call_operand.vmem [shape: f32[1,128], index: 11, kind: input, shape index: {}]   ;;  %s1714_s12 = inlined_call_operand.hbm [shape: f32[8,128], index: 12, kind: output, shape index: {}]  }
   0x1   :  { %v1290_v0 = vld [vmem:[%s1706_s4] sm:$0xff]   ;;  %1184 = vmatprep.subr.bf16.mxu1 %v1384_v1  ;;  %v1292_v3 = vld [vmem:[%s1706_s4 + $0x8] sm:$0xff]   ;;  %1188 = vmatprep.mubr.msk.bf16.mxu1 %vm1385_vm0, %v1384_v1  ;;  %v1473_v5 = vld [vmem:[%s1702_s0 + $0x38] sm:$0xff] }
   0x2   :  { %v1291_v2 = vld [vmem:[%s1703_s1] sm:$0xff]   ;;  %1185 = vmatpush3.bf16.msra.mxu1 %v1290_v0  ;;  %v1293_v4 = vld [vmem:[%s1703_s1 + $0x8] sm:$0xff]   ;;  %v156_v6 = vpack.c.bf16 %v1473_v5, %v1473_v5  ;;  %v45_v11 = vld [vmem:[%s1702_s0 + $0x10] sm:$0xff] }
   0x3   :  { %1172 = vmatprep.subr.bf16.mxu0 %v1291_v2  ;;  %1186 = vmatprep.subr.bf16.mxu1 %v1384_v1  ;;  %v1480_v7 = vld [vmem:[%s1704_s2] sm:$0xff]   ;;  %v44_v9 = vld [vmem:[%s1702_s0 + $0x8] sm:$0xff]  ;;  %v46_v12 = vld [vmem:[%s1702_s0 + $0x18] sm:$0xff] }
   0x4   :  { %1173 = vmatpush3.bf16.msra.mxu0 %v1291_v2  ;;  %v43_v8 = vld [vmem:[%s1702_s0] sm:$0xff]  ;;  %v52_v13 = vpack.c.bf16 %v46_v12, %v45_v11  ;;  %v1499_v14 = vld [vmem:[%s1704_s2 + $0x8] sm:$0xff]  }
   0x5   :  { %1174 = vmatprep.subr.bf16.mxu0 %v1293_v4  ;;  %v51_v10 = vpack.c.bf16 %v44_v9, %v43_v8  ;;  %v227_v15 = vld [vmem:[%s1709_s7] sm:$0xff] }
   0x6   :  { %1187 = vmatpush3.bf16.msra.mxu1 %v1292_v3 }
   0x7   :  { %1192 = vmatprep.subr.bf16.mxu1 %v1384_v1  ;;  %1176 = vmatprep.mubr.msk.bf16.mxu0 %vm78_vm1, %v51_v10 }
   0x8   :  { %1175 = vmatpush3.bf16.msra.mxu0 %v1293_v4 }
   0x9   :  { %1189 = vmatmul.mubr.msk.bf16.vlgmr.msra.gmra.mrb[0].mxu1 %vm78_vm1, %v156_v6  ;;  %1200 = vmatprep.subr.bf16.mxu0 %v1384_v1 }
   0xa   :  { %1193 = vmatpush3.bf16.msra.mxu1 %v1480_v7  ;;  %1196 = vmatprep.mubr.msk.bf16.mxu1 %vm1385_vm0, %v1384_v1 }
   0xb   :  { %1177 = vmatmul.mubr.msk.bf16.vlgmr.msra.gmra.mrb[0].mxu0 %vm78_vm1, %v52_v13  ;;  %1194 = vmatprep.subr.bf16.mxu1 %v1384_v1 }
   0xc   :  { %1201 = vmatpush3.bf16.msra.mxu0 %v1480_v7 }
   0xd   :  { %17 = vsyncpa [#allocation3], 0  ;;  %v229_v16 = vpack.c.bf16 %v227_v15, %v227_v15  ;;  %1202 = vmatprep.subr.bf16.mxu0 %v1384_v1  ;;  %v1529_v18 = vld [vmem:[%s1705_s3] ss:$0 sm:$0xff]  ;;  %s1386_s3 = smov 32   ;;  %v48_v42 = vld [vmem:[%s1702_s0 + $0x28] sm:$0xff] }
   0xe   :  { %1195 = vmatpush3.bf16.msra.mxu1 %v1499_v14  ;;  %v228_v34 = vld [vmem:[%s1710_s8] sm:$0xff]  ;;  %v49_v43 = vld [vmem:[%s1702_s0 + $0x30] sm:$0xff]  ;;  %s1387_s15 = smov 64  }
   0xf   :  { %1208 = vmatprep.subr.bf16.mxu1 %v1384_v1  ;;  %v47_v41 = vld [vmem:[%s1702_s0 + $0x20] sm:$0xff]  ;;  %v54_v45 = vpack.c.bf16 %v1473_v5, %v49_v43 }
  0x10   :  { %1203 = vmatpush3.bf16.msra.mxu0 %v1499_v14  ;;  %v53_v44 = vpack.c.bf16 %v48_v42, %v47_v41 }
  0x11   :  { %1197 = vmatmul.mubr.msk.bf16.vlgmr.msra.gmra.mrb[4].mxu1 %vm78_vm1, %v229_v16  ;;  %1216 = vmatprep.subr.bf16.mxu0 %v1384_v1 }
  0x12   :  { %1209 = vmatpush3.bf16.msra.mxu1 %v1480_v7  ;;  %1212 = vmatprep.mubr.msk.bf16.mxu1 %vm1385_vm0, %v1384_v1 }
  0x13   :  { %1210 = vmatprep.subr.bf16.mxu1 %v1384_v1  ;;  %1180 = vmatprep.mubr.msk.bf16.mxu0 %vm78_vm1, %v53_v44 }
  0x14   :  { %1181 = vmatmul.mubr.msk.bf16.gmra.mrb[4].mxu0 %vm78_vm1, %v54_v45 }
  0x15   :  { %1204 = vmatprep.mubr.msk.bf16.mxu0 %vm1385_vm0, %v1384_v1 }
  0x16   :  { %1211 = vmatpush3.bf16.msra.mxu1 %v1499_v14 }
  0x17   :  { %1224 = vmatprep.subr.bf16.mxu1 %v1384_v1 }
  0xde   :  { %v1524_v17 = vpop.f32.mrb[0].mxu0 }
  0xdf   :  { %v125_v19 = vpop.f32.mrb[1].mxu0  ;;  %v134_v16 = vadd.f32 %v1524_v17, %v1529_v18 }
  0xe0   :  { %v1531_v20 = vpop.f32.mrb[2].mxu0  ;;  %v126_v21 = vadd.f32 %v1529_v18, %v125_v19 }
  0xe1   :  { %v128_v22 = vpop.f32.mrb[3].mxu0 }
  0xe2   :  { %v129_v55 = vadd.f32 %v1529_v18, %v128_v22 }
  0xe4   :  { %v279_v23 = vpop.f32.mrb[4].mxu1 }
  0xe5   :  { %v285_v24 = vadd.f32 %v279_v23, %v126_v21  ;;  %v1198_v25 = vpop.f32.mrb[5].mxu1 }
  0xe6   :  { %v282_v26 = vpop.f32.mrb[6].mxu1 }
  0xe7   :  { %v1093_v27 = vmul.f32 -1.442695, %v285_v24  ;;  %v1199_v28 = vpop.f32.mrb[7].mxu1  ;;  %v1556_v50 = vpop.f32.mrb[4].mxu0 }
  0xe8   :  { %v1558_v51 = vpop.f32.mrb[5].mxu0 }
  0xe9   :  { %1302 = vpow2.f32 %v1093_v27  ;;  %v1560_v52 = vpop.f32.mrb[6].mxu0 }
  0xea   :  { %v1562_v53 = vpop.f32.mrb[7].mxu0 }
  0xf3   :  { %v1303_v29 = vpop.eup %1302 }
  0xf4   :  { %v289_v30 = vadd.f32 1.0, %v1303_v29 }
  0xf6   :  { %1304 = vrcp.f32 %v289_v30 }
 0x100   :  { %v1305_v31 = vpop.eup %1304 }
 0x101   :  { %v292_v32 = vmul.f32 2.0, %v1305_v31 }
 0x103   :  { %v1094_v33 = vadd.f32 -1.0, %v292_v32 }
 0x105   :  { %300 = vrot.lane.b32.xlu0 %v1094_v33, %s1386_s3 }
 0x109   :  { %295 = vrot.lane.b32.xlu0 %v228_v34, %s1386_s3 }
 0x177   :  { %v301_v35 = vpop.permute.xlu0 %300 }
 0x178   :  { %v303_v36 = vmul.f32 %v1305_v31, %v301_v35 }
 0x17a   :  { %305 = vrot.lane.b32.xlu1 %v303_v36, %s1386_s3 }
 0x17b   :  { %v296_v37 = vpop.permute.xlu0 %295 }
 0x17c   :  { %v298_v38 = vmul.f32 %v1305_v31, %v296_v37 }
 0x1ec   :  { %v306_v39 = vpop.permute.xlu1 %305 }
 0x1ed   :  { %v308_v40 = vadd.f32 %v306_v39, %v298_v38 }
 0x1ef   :  { %1306 = vtanh.f32 %v308_v40 }
 0x1f9   :  { %v1307_v46 = vpop.eup %1306 }
 0x1fa   :  { %311 = vrot.lane.b32.xlu1 %v1307_v46, %s1386_s3 }
 0x26c   :  { %v312_v47 = vpop.permute.xlu1 %311 }
 0x26d   :  { %v314_v48 = vmul.f32 %v1305_v31, %v312_v47 }
 0x26f   :  { %v315_v49 = vpack.c.bf16 %v314_v48, %v314_v48 }
 0x271   :  { %317 = vrot.lane.b32.xlu0 %v315_v49, %s1387_s15 }
 0x2e3   :  { %v318_v54 = vpop.permute.xlu0 %317 }
 0x2e4   :  { %1205 = vmatmul.mubr.msk.bf16.vlgmr.msra.gmra.mrb[8].mxu0 %vm78_vm1, %v318_v54 }
 0x2e5   :  { %1217 = vmatpush3.bf16.msra.mxu0 %v1480_v7  ;;  %1220 = vmatprep.mubr.msk.bf16.mxu0 %vm1385_vm0, %v1384_v1 }
 0x2e6   :  { %1218 = vmatprep.subr.bf16.mxu0 %v1384_v1 }
 0x2e9   :  { %1219 = vmatpush3.bf16.msra.mxu0 %v1499_v14 }
 0x2ea   :  { %1232 = vmatprep.subr.bf16.mxu0 %v1384_v1 }
 0x3b7   :  { %v356_v56 = vpop.f32.mrb[8].mxu0 }
 0x3b8   :  { %v362_v57 = vadd.f32 %v356_v56, %v129_v55  ;;  %v1206_v58 = vpop.f32.mrb[9].mxu0 }
 0x3b9   :  { %v359_v59 = vpop.f32.mrb[10].mxu0 }
 0x3ba   :  { %v1096_v60 = vmul.f32 -1.442695, %v362_v57  ;;  %v1207_v61 = vpop.f32.mrb[11].mxu0 }
 0x3bc   :  { %1308 = vpow2.f32 %v1096_v60 }
 0x3c6   :  { %v1309_v62 = vpop.eup %1308 }
 0x3c7   :  { %v366_v63 = vadd.f32 1.0, %v1309_v62 }
 0x3c9   :  { %1310 = vrcp.f32 %v366_v63 }
 0x3d3   :  { %v1311_v0 = vpop.eup %1310 }
 0x3d4   :  { %v369_v2 = vmul.f32 2.0, %v1311_v0  ;;  %v371_v6 = vmul.f32 %v1311_v0, %v308_v40  ;;  %v137_v40 = vadd.f32 %v1531_v20, %v1529_v18 }
 0x3d6   :  { %v1097_v3 = vadd.f32 -1.0, %v369_v2  ;;  %v142_v2 = vadd.f32 %v1529_v18, %v1558_v51 }
 0x3d8   :  { %373 = vrot.lane.b32.xlu1 %v1097_v3, %s1386_s3 }
 0x44a   :  { %v374_v4 = vpop.permute.xlu1 %373 }
 0x44b   :  { %v376_v5 = vmul.f32 %v1311_v0, %v374_v4 }
 0x44d   :  { %378 = vrot.lane.b32.xlu0 %v376_v5, %s1386_s3 }
 0x4bf   :  { %v379_v8 = vpop.permute.xlu0 %378 }
 0x4c0   :  { %v381_v9 = vadd.f32 %v379_v8, %v371_v6 }
 0x4c2   :  { %1312 = vtanh.f32 %v381_v9 }
 0x4cc   :  { %v1313_v10 = vpop.eup %1312 }
 0x4cd   :  { %384 = vrot.lane.b32.xlu1 %v1313_v10, %s1386_s3 }
 0x53f   :  { %v385_v11 = vpop.permute.xlu1 %384 }
 0x540   :  { %v387_v12 = vmul.f32 %v1311_v0, %v385_v11 }
 0x542   :  { %v388_v13 = vpack.c.bf16 %v387_v12, %v387_v12 }
 0x544   :  { %390 = vrot.lane.b32.xlu0 %v388_v13, %s1387_s15 }
 0x5b6   :  { %v391_v15 = vpop.permute.xlu0 %390 }
 0x5b7   :  { %1213 = vmatmul.mubr.msk.bf16.vlgmr.msra.gmra.mrb[8].mxu1 %vm78_vm1, %v391_v15 }
 0x5b8   :  { %1225 = vmatpush3.bf16.msra.mxu1 %v1480_v7  ;;  %1228 = vmatprep.mubr.msk.bf16.mxu1 %vm1385_vm0, %v1384_v1 }
 0x5b9   :  { %1226 = vmatprep.subr.bf16.mxu1 %v1384_v1 }
 0x5bc   :  { %1227 = vmatpush3.bf16.msra.mxu1 %v1499_v14 }
 0x5bd   :  { %1240 = vmatprep.subr.bf16.mxu1 %v1384_v1 }
 0x68a   :  { %v429_v19 = vpop.f32.mrb[8].mxu1 }
 0x68b   :  { %v435_v21 = vadd.f32 %v429_v19, %v134_v16  ;;  %v1214_v22 = vpop.f32.mrb[9].mxu1 }
 0x68c   :  { %v432_v23 = vpop.f32.mrb[10].mxu1 }
 0x68d   :  { %v1099_v24 = vmul.f32 -1.442695, %v435_v21  ;;  %v1215_v25 = vpop.f32.mrb[11].mxu1 }
 0x68f   :  { %1314 = vpow2.f32 %v1099_v24 }
 0x699   :  { %v1315_v26 = vpop.eup %1314 }
 0x69a   :  { %v439_v27 = vadd.f32 1.0, %v1315_v26 }
 0x69c   :  { %1316 = vrcp.f32 %v439_v27 }
 0x6a6   :  { %v1317_v28 = vpop.eup %1316 }
 0x6a7   :  { %v442_v29 = vmul.f32 2.0, %v1317_v28  ;;  %v444_v17 = vmul.f32 %v1317_v28, %v381_v9 }
 0x6a9   :  { %v1100_v30 = vadd.f32 -1.0, %v442_v29 }
 0x6ab   :  { %446 = vrot.lane.b32.xlu1 %v1100_v30, %s1386_s3 }
 0x71d   :  { %v447_v31 = vpop.permute.xlu1 %446 }
 0x71e   :  { %v449_v32 = vmul.f32 %v1317_v28, %v447_v31 }
 0x720   :  { %451 = vrot.lane.b32.xlu0 %v449_v32, %s1386_s3 }
 0x792   :  { %v452_v33 = vpop.permute.xlu0 %451 }
 0x793   :  { %v454_v34 = vadd.f32 %v452_v33, %v444_v17 }
 0x795   :  { %1318 = vtanh.f32 %v454_v34 }
 0x79f   :  { %v1319_v35 = vpop.eup %1318 }
 0x7a0   :  { %457 = vrot.lane.b32.xlu1 %v1319_v35, %s1386_s3 }
 0x812   :  { %v458_v36 = vpop.permute.xlu1 %457 }
 0x813   :  { %v460_v37 = vmul.f32 %v1317_v28, %v458_v36  ;;  %v145_v28 = vadd.f32 %v1529_v18, %v1562_v53 }
 0x815   :  { %v461_v38 = vpack.c.bf16 %v460_v37, %v460_v37 }
 0x817   :  { %463 = vrot.lane.b32.xlu0 %v461_v38, %s1387_s15 }
 0x889   :  { %v464_v39 = vpop.permute.xlu0 %463 }
 0x88a   :  { %1221 = vmatmul.mubr.msk.bf16.vlgmr.msra.gmra.mrb[12].mxu0 %vm78_vm1, %v464_v39 }
 0x88b   :  { %1233 = vmatpush3.bf16.msra.mxu0 %v1480_v7  ;;  %1236 = vmatprep.mubr.msk.bf16.mxu0 %vm1385_vm0, %v1384_v1 }
 0x88c   :  { %1234 = vmatprep.subr.bf16.mxu0 %v1384_v1 }
 0x88f   :  { %1235 = vmatpush3.bf16.msra.mxu0 %v1499_v14 }
 0x890   :  { %1248 = vmatprep.subr.bf16.mxu0 %v1384_v1 }
 0x95d   :  { %v502_v41 = vpop.f32.mrb[12].mxu0 }
 0x95e   :  { %v508_v42 = vadd.f32 %v502_v41, %v137_v40  ;;  %v1222_v43 = vpop.f32.mrb[13].mxu0 }
 0x95f   :  { %v505_v44 = vpop.f32.mrb[14].mxu0 }
 0x960   :  { %v1102_v45 = vmul.f32 -1.442695, %v508_v42  ;;  %v1223_v46 = vpop.f32.mrb[15].mxu0 }
 0x962   :  { %1320 = vpow2.f32 %v1102_v45  ;;  %v1296_v45 = vld [vmem:[%s1707_s5] sm:$0xff]  }
 0x96c   :  { %v1321_v47 = vpop.eup %1320 }
 0x96d   :  { %v512_v48 = vadd.f32 1.0, %v1321_v47  ;;  %v1297_v47 = vld [vmem:[%s1707_s5 + $0x8] sm:$0xff]  }
 0x96f   :  { %1322 = vrcp.f32 %v512_v48  ;;  %v1116_v48 = vld [vmem:[%s1709_s7 + $0x8] sm:$0xff] }
 0x979   :  { %v1323_v49 = vpop.eup %1322 }
 0x97a   :  { %v515_v54 = vmul.f32 2.0, %v1323_v49  ;;  %v517_v20 = vmul.f32 %v1323_v49, %v454_v34 }
 0x97c   :  { %v1103_v55 = vadd.f32 -1.0, %v515_v54  ;;  %v150_v54 = vadd.f32 %v1556_v50, %v1529_v18 }
 0x97e   :  { %519 = vrot.lane.b32.xlu1 %v1103_v55, %s1386_s3 }
 0x9f0   :  { %v520_v56 = vpop.permute.xlu1 %519 }
 0x9f1   :  { %v522_v57 = vmul.f32 %v1323_v49, %v520_v56 }
 0x9f3   :  { %524 = vrot.lane.b32.xlu0 %v522_v57, %s1386_s3 }
 0xa65   :  { %v525_v58 = vpop.permute.xlu0 %524 }
 0xa66   :  { %v527_v59 = vadd.f32 %v525_v58, %v517_v20 }
 0xa68   :  { %1324 = vtanh.f32 %v527_v59 }
 0xa72   :  { %v1325_v60 = vpop.eup %1324 }
 0xa73   :  { %530 = vrot.lane.b32.xlu1 %v1325_v60, %s1386_s3 }
 0xae5   :  { %v531_v61 = vpop.permute.xlu1 %530 }
 0xae6   :  { %v533_v62 = vmul.f32 %v1323_v49, %v531_v61  ;;  %v828_v49 = vpack.c.bf16 %v1116_v48, %v1116_v48  ;;  %v1300_v48 = vld [vmem:[%s1711_s9] sm:$0xff]  }
 0xae8   :  { %v534_v63 = vpack.c.bf16 %v533_v62, %v533_v62 }
 0xaea   :  { %536 = vrot.lane.b32.xlu0 %v534_v63, %s1387_s15 }
 0xb5c   :  { %v537_v0 = vpop.permute.xlu0 %536 }
 0xb5d   :  { %1229 = vmatmul.mubr.msk.bf16.vlgmr.msra.gmra.mrb[12].mxu1 %vm78_vm1, %v537_v0 }
 0xb5e   :  { %1241 = vmatpush3.bf16.msra.mxu1 %v1480_v7  ;;  %1244 = vmatprep.mubr.msk.bf16.mxu1 %vm1385_vm0, %v1384_v1 }
 0xb5f   :  { %1242 = vmatprep.subr.bf16.mxu1 %v1384_v1 }
 0xb62   :  { %1243 = vmatpush3.bf16.msra.mxu1 %v1499_v14 }
 0xb63   :  { %1256 = vmatprep.subr.bf16.mxu1 %v1384_v1 }
 0xc30   :  { %v575_v3 = vpop.f32.mrb[12].mxu1 }
 0xc31   :  { %v581_v4 = vadd.f32 %v575_v3, %v142_v2  ;;  %v1230_v5 = vpop.f32.mrb[13].mxu1 }
 0xc32   :  { %v578_v6 = vpop.f32.mrb[14].mxu1 }
 0xc33   :  { %v1105_v8 = vmul.f32 -1.442695, %v581_v4  ;;  %v1231_v9 = vpop.f32.mrb[15].mxu1 }
 0xc35   :  { %1326 = vpow2.f32 %v1105_v8 }
 0xc3f   :  { %v1327_v10 = vpop.eup %1326 }
 0xc40   :  { %v585_v11 = vadd.f32 1.0, %v1327_v10 }
 0xc42   :  { %1328 = vrcp.f32 %v585_v11 }
 0xc4c   :  { %v1329_v12 = vpop.eup %1328 }
 0xc4d   :  { %v588_v13 = vmul.f32 2.0, %v1329_v12  ;;  %v590_v51 = vmul.f32 %v1329_v12, %v527_v59 }
 0xc4f   :  { %v1106_v15 = vadd.f32 -1.0, %v588_v13 }
 0xc51   :  { %592 = vrot.lane.b32.xlu1 %v1106_v15, %s1386_s3 }
 0xcc3   :  { %v593_v16 = vpop.permute.xlu1 %592 }
 0xcc4   :  { %v595_v19 = vmul.f32 %v1329_v12, %v593_v16 }
 0xcc6   :  { %597 = vrot.lane.b32.xlu0 %v595_v19, %s1386_s3 }
 0xd38   :  { %v598_v21 = vpop.permute.xlu0 %597 }
 0xd39   :  { %v600_v22 = vadd.f32 %v598_v21, %v590_v51 }
 0xd3b   :  { %1330 = vtanh.f32 %v600_v22 }
 0xd45   :  { %v1331_v23 = vpop.eup %1330 }
 0xd46   :  { %603 = vrot.lane.b32.xlu1 %v1331_v23, %s1386_s3 }
 0xdb8   :  { %v604_v24 = vpop.permute.xlu1 %603 }
 0xdb9   :  { %v606_v25 = vmul.f32 %v1329_v12, %v604_v24  ;;  %v1086_v12 = vld [vmem:[%s1708_s6] ss:$0 sm:$0xff] }
 0xdbb   :  { %v607_v26 = vpack.c.bf16 %v606_v25, %v606_v25 }
 0xdbd   :  { %609 = vrot.lane.b32.xlu0 %v607_v26, %s1387_s15 }
 0xe2f   :  { %v610_v27 = vpop.permute.xlu0 %609 }
 0xe30   :  { %1237 = vmatmul.mubr.msk.bf16.vlgmr.msra.gmra.mrb[16].mxu0 %vm78_vm1, %v610_v27  ;;  %v153_v27 = vadd.f32 %v1560_v52, %v1529_v18 }
 0xe31   :  { %1249 = vmatpush3.bf16.msra.mxu0 %v1480_v7  ;;  %1252 = vmatprep.mubr.msk.bf16.mxu0 %vm1385_vm0, %v1384_v1 }
 0xe32   :  { %1250 = vmatprep.subr.bf16.mxu0 %v1384_v1 }
 0xe35   :  { %1251 = vmatpush3.bf16.msra.mxu0 %v1499_v14 }
 0xe36   :  { %1264 = vmatprep.subr.bf16.mxu0 %v1384_v1 }
 0xf03   :  { %v648_v29 = vpop.f32.mrb[16].mxu0 }
 0xf04   :  { %v654_v30 = vadd.f32 %v648_v29, %v145_v28  ;;  %v1238_v31 = vpop.f32.mrb[17].mxu0 }
 0xf05   :  { %v651_v32 = vpop.f32.mrb[18].mxu0 }
 0xf06   :  { %v1108_v17 = vmul.f32 -1.442695, %v654_v30  ;;  %v1239_v33 = vpop.f32.mrb[19].mxu0 }
 0xf08   :  { %1332 = vpow2.f32 %v1108_v17 }
 0xf12   :  { %v1333_v7 = vpop.eup %1332 }
 0xf13   :  { %v658_v34 = vadd.f32 1.0, %v1333_v7 }
 0xf15   :  { %1334 = vrcp.f32 %v658_v34 }
 0xf1f   :  { %v1335_v35 = vpop.eup %1334 }
 0xf20   :  { %v661_v36 = vmul.f32 2.0, %v1335_v35  ;;  %v663_v53 = vmul.f32 %v1335_v35, %v600_v22 }
 0xf22   :  { %v1109_v37 = vadd.f32 -1.0, %v661_v36 }
 0xf24   :  { %665 = vrot.lane.b32.xlu1 %v1109_v37, %s1386_s3  ;;  %v1120_v37 = vld [vmem:[%s1710_s8 + $0x8] sm:$0xff] }
 0xf96   :  { %v666_v14 = vpop.permute.xlu1 %665 }
 0xf97   :  { %v668_v38 = vmul.f32 %v1335_v35, %v666_v14 }
 0xf99   :  { %670 = vrot.lane.b32.xlu0 %v668_v38, %s1386_s3 }
0x100b   :  { %v671_v39 = vpop.permute.xlu0 %670 }
0x100c   :  { %v673_v40 = vadd.f32 %v671_v39, %v663_v53 }
0x100e   :  { %1336 = vtanh.f32 %v673_v40 }
0x1018   :  { %v1337_v41 = vpop.eup %1336 }
0x1019   :  { %676 = vrot.lane.b32.xlu1 %v1337_v41, %s1386_s3 }
0x108b   :  { %v677_v42 = vpop.permute.xlu1 %676 }
0x108c   :  { %v679_v43 = vmul.f32 %v1335_v35, %v677_v42 }
0x108e   :  { %v680_v44 = vpack.c.bf16 %v679_v43, %v679_v43 }
0x1090   :  { %682 = vrot.lane.b32.xlu0 %v680_v44, %s1387_s15 }
0x1102   :  { %v683_v46 = vpop.permute.xlu0 %682 }
0x1103   :  { %1245 = vmatmul.mubr.msk.bf16.vlgmr.msra.gmra.mrb[16].mxu1 %vm78_vm1, %v683_v46  ;;  %v1298_v46 = vld [vmem:[%s1712_s10] sm:$0xff]  }
0x1104   :  { %1257 = vmatpush3.bf16.msra.mxu1 %v1296_v45  ;;  %1260 = vmatprep.mubr.msk.bf16.mxu1 %vm1385_vm0, %v1384_v1 }
0x1105   :  { %1258 = vmatprep.subr.bf16.mxu1 %v1384_v1 }
0x1108   :  { %1259 = vmatpush3.bf16.msra.mxu1 %v1297_v47  ;;  %v1299_v47 = vld [vmem:[%s1712_s10 + $0x8] sm:$0xff]  }
0x1109   :  { %1272 = vmatprep.subr.bf16.mxu1 %v1384_v1 }
0x110b   :  { %1261 = vmatmul.mubr.msk.bf16.vlgmr.msra.gmra.mrb[0].mxu1 %vm78_vm1, %v828_v49 }
0x110c   :  { %1276 = vmatprep.mubr.msk.bf16.mxu1 %vm1385_vm0, %v1384_v1  ;;  %1273 = vmatpush3.bf16.msra.mxu1 %v1300_v48 }
0x110d   :  { %1274 = vmatprep.subr.bf16.mxu1 %v1384_v1 }
0x11d6   :  { %v721_v55 = vpop.f32.mrb[16].mxu1 }
0x11d7   :  { %v727_v56 = vadd.f32 %v721_v55, %v150_v54  ;;  %v1246_v57 = vpop.f32.mrb[17].mxu1  ;;  %v1301_v54 = vld [vmem:[%s1711_s9 + $0x8] sm:$0xff]  }
0x11d8   :  { %v724_v20 = vpop.f32.mrb[18].mxu1  ;;  %1275 = vmatpush3.bf16.msra.mxu1 %v1301_v54 }
0x11d9   :  { %v1111_v58 = vmul.f32 -1.442695, %v727_v56  ;;  %v1247_v59 = vpop.f32.mrb[19].mxu1 }
0x11db   :  { %1338 = vpow2.f32 %v1111_v58 }
0x11de   :  { %v882_v60 = vpop.f32.mrb[0].mxu1 }
0x11df   :  { %v1262_v61 = vpop.f32.mrb[1].mxu1  ;;  %v1280_v13 = vadd.f32 %v1086_v12, %v882_v60 }
0x11e0   :  { %v885_v62 = vpop.f32.mrb[2].mxu1 }
0x11e1   :  { %v1263_v63 = vpop.f32.mrb[3].mxu1  ;;  %v1121_v15 = vmul.f32 -1.442695, %v1280_v13 }
0x11e5   :  { %v1339_v0 = vpop.eup %1338 }
0x11e6   :  { %v731_v2 = vadd.f32 1.0, %v1339_v0 }
0x11e8   :  { %1340 = vrcp.f32 %v731_v2 }
0x11f2   :  { %v1341_v3 = vpop.eup %1340 }
0x11f3   :  { %v734_v4 = vmul.f32 2.0, %v1341_v3  ;;  %v736_v8 = vmul.f32 %v1341_v3, %v673_v40 }
0x11f5   :  { %v1112_v5 = vadd.f32 -1.0, %v734_v4 }
0x11f7   :  { %738 = vrot.lane.b32.xlu1 %v1112_v5, %s1386_s3 }
0x1269   :  { %v739_v50 = vpop.permute.xlu1 %738 }
0x126a   :  { %v741_v6 = vmul.f32 %v1341_v3, %v739_v50 }
0x126c   :  { %743 = vrot.lane.b32.xlu0 %v741_v6, %s1386_s3 }
0x12de   :  { %v744_v9 = vpop.permute.xlu0 %743 }
0x12df   :  { %v746_v10 = vadd.f32 %v744_v9, %v736_v8 }
0x12e1   :  { %1342 = vtanh.f32 %v746_v10 }
0x12e2   :  { %1344 = vpow2.f32 %v1121_v15 }
0x12eb   :  { %v1343_v11 = vpop.eup %1342 }
0x12ec   :  { %749 = vrot.lane.b32.xlu1 %v1343_v11, %s1386_s3  ;;  %v1345_v16 = vpop.eup %1344 }
0x12ed   :  { %v894_v19 = vadd.f32 1.0, %v1345_v16 }
0x12ef   :  { %1346 = vrcp.f32 %v894_v19 }
0x12f9   :  { %v1347_v51 = vpop.eup %1346 }
0x12fa   :  { %v897_v24 = vmul.f32 2.0, %v1347_v51 }
0x12fc   :  { %v1122_v25 = vadd.f32 -1.0, %v897_v24 }
0x135e   :  { %v750_v21 = vpop.permute.xlu1 %749 }
0x135f   :  { %v752_v22 = vmul.f32 %v1341_v3, %v750_v21  ;;  %v1129_v3 = vld [vmem:[%s1713_s11] ss:$0 sm:$0xff] }
0x1361   :  { %v753_v23 = vpack.c.bf16 %v752_v22, %v752_v22 }
0x1363   :  { %755 = vrot.lane.b32.xlu0 %v753_v23, %s1387_s15 }
0x1367   :  { %905 = vrot.lane.b32.xlu0 %v1122_v25, %s1386_s3 }
0x13d5   :  { %v756_v26 = vpop.permute.xlu0 %755 }
0x13d6   :  { %1253 = vmatmul.mubr.msk.bf16.vlgmr.msra.gmra.mrb[20].mxu0 %vm78_vm1, %v756_v26 }
0x13d7   :  { %1268 = vmatprep.mubr.msk.bf16.mxu0 %vm1385_vm0, %v1384_v1  ;;  %1265 = vmatpush3.bf16.msra.mxu0 %v1298_v46 }
0x13d8   :  { %1266 = vmatprep.subr.bf16.mxu0 %v1384_v1 }
0x13d9   :  { %v906_v18 = vpop.permute.xlu0 %905 }
0x13da   :  { %v908_v52 = vmul.f32 %v1347_v51, %v906_v18 }
0x13db   :  { %1267 = vmatpush3.bf16.msra.mxu0 %v1299_v47 }
0x14a9   :  { %v794_v28 = vpop.f32.mrb[20].mxu0 }
0x14aa   :  { %v800_v29 = vadd.f32 %v794_v28, %v153_v27  ;;  %v1254_v30 = vpop.f32.mrb[21].mxu0 }
0x14ab   :  { %v797_v31 = vpop.f32.mrb[22].mxu0 }
0x14ac   :  { %v1114_v32 = vmul.f32 -1.442695, %v800_v29  ;;  %v1255_v17 = vpop.f32.mrb[23].mxu0 }
0x14ae   :  { %1348 = vpow2.f32 %v1114_v32 }
0x14b8   :  { %v1349_v33 = vpop.eup %1348 }
0x14b9   :  { %v804_v7 = vadd.f32 1.0, %v1349_v33 }
0x14bb   :  { %1350 = vrcp.f32 %v804_v7 }
0x14c5   :  { %v1351_v34 = vpop.eup %1350 }
0x14c6   :  { %v807_v35 = vmul.f32 2.0, %v1351_v34  ;;  %v809_v43 = vmul.f32 %v1351_v34, %v746_v10 }
0x14c8   :  { %v1115_v36 = vadd.f32 -1.0, %v807_v35 }
0x14ca   :  { %811 = vrot.lane.b32.xlu1 %v1115_v36, %s1386_s3 }
0x14ce   :  { %900 = vrot.lane.b32.xlu1 %v1120_v37, %s1386_s3 }
0x14d2   :  { %910 = vrot.lane.b32.xlu1 %v908_v52, %s1386_s3 }
0x153c   :  { %v812_v14 = vpop.permute.xlu1 %811 }
0x153d   :  { %v814_v38 = vmul.f32 %v1351_v34, %v812_v14 }
0x153f   :  { %816 = vrot.lane.b32.xlu0 %v814_v38, %s1386_s3 }
0x1540   :  { %v901_v53 = vpop.permute.xlu1 %900 }
0x1541   :  { %v903_v39 = vmul.f32 %v1347_v51, %v901_v53 }
0x1544   :  { %v911_v40 = vpop.permute.xlu1 %910 }
0x1545   :  { %v913_v41 = vadd.f32 %v911_v40, %v903_v39 }
0x1547   :  { %1352 = vtanh.f32 %v913_v41 }
0x1551   :  { %v1353_v42 = vpop.eup %1352 }
0x1552   :  { %916 = vrot.lane.b32.xlu1 %v1353_v42, %s1386_s3 }
0x15b1   :  { %v817_v44 = vpop.permute.xlu0 %816 }
0x15b2   :  { %v819_v45 = vadd.f32 %v817_v44, %v809_v43 }
0x15b4   :  { %1354 = vtanh.f32 %v819_v45 }
0x15be   :  { %v1355_v49 = vpop.eup %1354 }
0x15bf   :  { %822 = vrot.lane.b32.xlu0 %v1355_v49, %s1386_s3  ;;  %s1388_s3 = smov [#allocation2]  }
0x15c0   :  { %s1071_s27 = sshll.u32 %s1388_s3, 4  ;;  %s1072_s27 = int_to_ptr.vmem [resolvable:$true] %s1071_s27 }
0x15c1   :  { %s1360_s11 = scalar_lea.vmem %s1072_s27, 128  ;;  %p1365_p1 = scmp.lt.s32.totalorder %s1072_s27, %s1072_s27 }
0x15c2   :  { %p1361_p0 = scmp.ne.s32.totalorder %s1072_s27, %s1360_s11  ;;  %p1366_p2 = scmp.lt.s32.totalorder %s1360_s11, %s1360_s11 }
0x15c4   :  { %v917_v55 = vpop.permute.xlu1 %916  ;;  %p1367_p3 = por %p1366_p2, %p1365_p1 }
0x15c5   :  { %v919_v56 = vmul.f32 %v1347_v51, %v917_v55 }
0x15c6   :  { %p1368_p4 = pnand %p1367_p3, %p1361_p0 }
0x15c7   :  { %v925_v57 = vpack.c.bf16 %v919_v56, %v919_v56 }
0x15c9   :  { %931 = vrot.lane.b32.xlu0 %v925_v57, %s1387_s15 }
0x1631   :  { %v823_v20 = vpop.permute.xlu0 %822 }
0x1632   :  { %v825_v58 = vmul.f32 %v1351_v34, %v823_v20 }
0x1634   :  { %v920_v59 = vpack.c.bf16 %v825_v58, %v825_v58 }
0x1636   :  { %989 = vrot.lane.b32.xlu1 %v920_v59, %s1387_s15 }
0x163b   :  { %v932_v60 = vpop.permute.xlu0 %931 }
0x163c   :  { %1269 = vmatmul.mubr.msk.bf16.vlgmr.msra.gmra.mrb[24].mxu0 %vm78_vm1, %v932_v60 }
0x16a8   :  { %v990_v61 = vpop.permute.xlu1 %989 }
0x16a9   :  { %1277 = vmatmul.mubr.msk.bf16.vlgmr.msra.gmra.mrb[20].mxu1 %vm78_vm1, %v990_v61 }
0x170f   :  { %v982_v62 = vpop.f32.mrb[24].mxu0 }
0x1710   :  { %v1270_v63 = vpop.f32.mrb[25].mxu0 }
0x1711   :  { %v985_v1 = vpop.f32.mrb[26].mxu0 }
0x1712   :  { %v1271_v0 = vpop.f32.mrb[27].mxu0 }
0x177c   :  { %v1040_v2 = vpop.f32.mrb[20].mxu1 }
0x177d   :  { %v1041_v4 = vadd.f32 %v1040_v2, %v982_v62  ;;  %v1278_v5 = vpop.f32.mrb[21].mxu1 }
0x177e   :  { %v1043_v50 = vpop.f32.mrb[22].mxu1 }
0x177f   :  { %v1279_v6 = vpop.f32.mrb[23].mxu1  ;;  %v1053_v8 = vadd.f32 %v1129_v3, %v1041_v4 }
0x1781   :  { %1054 = vmax.xlane.f32.xlu0 %v1053_v8 }
0x180e   :  { %v1055_v9 = vpop.xlane.xlu0 %1054 }
0x180f   :  { %v1056_v10 = vsub.f32 %v1053_v8, %v1055_v9 }
0x1811   :  { %v1057_v11 = vmul.f32 1.442695, %v1056_v10 }
0x1813   :  { %1356 = vpow2.f32 %v1057_v11 }
0x181d   :  { %v1357_v12 = vpop.eup %1356 }
0x181e   :  { %1059 = vadd.xlane.f32.xlu1 %v1357_v12 }
0x18ab   :  { %v1060_v13 = vpop.xlane.xlu1 %1059 }
0x18ac   :  { %1358 = vlog2.f32 %v1060_v13 }
0x18b6   :  { %v1359_v15 = vpop.eup %1358 }
0x18b7   :  { %v1062_v16 = vmul.f32 0.6931472, %v1359_v15 }
0x18b9   :  { %v1063_v19 = vsub.f32 %v1056_v10, %v1062_v16 }
0x18bb   :  { %1064 = vst [vmem:[#allocation2] sm:$0xff] %v1063_v19 }
0x18bc   :  { %1371 = shalt.err (!%p1368_p4)
}
0x18bd   :  { %s1372_s30 = scalar_lea.hbm %s1714_s12, 128 }
0x18be   :  { %p1373_p5 = scmp.ne.s32.totalorder %s1714_s12, %s1372_s30  ;;  %p1376_p6 = scmp.lt.u32.totalorder %s1372_s30, %s1714_s12 }
0x18c0   :  { %p1378_p7 = pnand %p1376_p6, %p1373_p5 }
0x18c2   :  { %1381 = shalt.err (!%p1378_p7)
}
0x18c3   :  { %1074 = dma.vmem_to_hbm [thread:$0]  %s1072_s27, 128, %s1714_s12, [#allocation3]  }
0x18c4   :  { %1382 = dma.done.wait [#allocation3], 128  }
0x18c5   :  { %1383 = vsyncadd [#allocation3], 4294967168 }
0x18c6   :  { %1078 = vsyncpa [#allocation3], 1 }

</bundles_post_ra>
